<compile_context>
chip_gen: v6e
topology: v6e:2x2x1
jax: 0.10.0
libtpu: 0.0.40
codegen_flags: <defaults>
</compile_context>

<pallas_src>
import functools

import numpy as np
import jax
import jax.numpy as jnp
from jax import lax
from jax.experimental import pallas as pl
from jax.experimental.pallas import tpu as pltpu


def _elu(v):
    # clamp exp argument so the unselected branch never produces inf
    # (expm1 lowering support in Mosaic is uncertain, so keep exp - 1)
    return jnp.where(v > 0, v, jnp.exp(jnp.minimum(v, 0.0)) - 1.0)


def _make_tap_masks(H, W, d):
    """(9, H*W) {0,1} f32 masks: tap k=(kh*3+kw) is valid at pixel p iff the dilated
    source pixel (i+ (kh-1)d, j + (kw-1)d) is inside the image."""
    p = np.arange(H * W)
    ii, jj = p // W, p % W
    rows = []
    for kh in range(3):
        for kw in range(3):
            dy, dx = (kh - 1) * d, (kw - 1) * d
            rows.append((ii + dy >= 0) & (ii + dy < H) & (jj + dx >= 0) & (jj + dx < W))
    return jnp.asarray(np.stack(rows).astype(np.float32))


def afdilation_kernel(x_ref, s1_ref, b1_ref, wd_ref, bd_ref, wc_ref, bc_ref,
                      wu_ref, bu_ref, mask_ref, o_ref, *, W, d):
    """Fused AF dilation block; channels on sublanes, per-image pixels (H*W) on lanes.

    x_ref   : (bb, C, HW)  block of bb images in (N, C, H*W) layout
    s1/b1   : (C, 1)       BN1 fused scale / bias
    wd/bd   : (Cmid, C), (Cmid, 1)         1x1 project-down (BN2 folded in)
    wc/bc   : (9, Cmid, Cmid), (Cmid, 1)   dilated 3x3 conv, tap-major (BN3 folded in)
    wu/bu   : (C, Cmid), (C, 1)            1x1 project-up
    mask    : (9, HW)      precomputed boundary masks per tap
    """
    bb, C, HW = x_ref.shape
    mm_dtype = wd_ref.dtype   # bf16 on v6e/v7x path, f32 otherwise

    # Load weights / params once; reused across the (unrolled) per-image loop.
    s1 = s1_ref[...]
    b1 = b1_ref[...]
    wd = wd_ref[...]
    bd = bd_ref[...]
    wc = wc_ref[...]
    bc = bc_ref[...]
    wu = wu_ref[...]
    bu = bu_ref[...]
    masks = mask_ref[...]

    offs = [((kh - 1) * d, (kw - 1) * d) for kh in range(3) for kw in range(3)]

    for b in range(bb):
        x = x_ref[b]                                            # (C, HW), f32
        # BN1 affine + ELU (f32 elementwise)
        h = _elu(x * s1 + b1)

        # project-down: one small MXU matmul (bf16 operands optional, f32 accumulate)
        h2 = jnp.dot(wd, h.astype(mm_dtype),
                     preferred_element_type=jnp.float32) + bd
        h2 = _elu(h2)                                           # (Cmid, HW), f32

        # Dilated 3x3 conv: accumulate 9 small matmuls over rolled + masked copies.
        # rolled[p] = h2[(p + dy*W + dx) mod HW]; the mask zeroes every out-of-image
        # (and hence every wrapped) pixel, so the modular roll is exact.
        acc = None
        for k, (dy, dx) in enumerate(offs):
            off = dy * W + dx
            shift = (-off) % HW                                 # non-negative, jnp.roll sign
            rolled = h2 if shift == 0 else pltpu.roll(h2, shift=shift, axis=1)
            tap = (rolled * masks[k:k + 1, :]).astype(mm_dtype)
            part = jnp.dot(wc[k], tap, preferred_element_type=jnp.float32)
            acc = part if acc is None else acc + part
        h3 = _elu(acc + bc)                                     # (Cmid, HW), f32

        # project-up + residual (residual re-read from the resident input block)
        out = jnp.dot(wu, h3.astype(mm_dtype),
                      preferred_element_type=jnp.float32) + bu
        o_ref[b] = out + x_ref[b]


def _pick_batch_block(N, C, HW):
    # Target ~2 MiB of f32 input per block (so ~4 MiB in+out plus intermediates) to
    # amortize the ~0.35 us per-grid-step overhead; cap at 8 images (the kernel
    # unrolls over images) and keep >=2 grid steps when N allows so the "parallel"
    # axis can shard across v7x's 2 TensorCores.
    budget_bytes = 2 * 1024 * 1024
    per_image_bytes = C * HW * 4
    bb = max(1, min(N, 8, budget_bytes // max(per_image_bytes, 1)))
    while bb > 1 and N // bb < 2:
        bb -= 1
    while N % bb:
        bb -= 1
    return bb


def afdilation_block(x_nchw, params, dilation, *, matmul_dtype=jnp.float32,
                     batch_block=None):
    """Pallas implementation of AFdilationblock.forward (inference-mode BN)."""
    N, C, H, W = x_nchw.shape
    Cmid = C // 2
    HW = H * W
    s1, b1, wd, bd, wc, bc, wu, bu = params        # wc: (9, Cmid, Cmid), tap-major

    if batch_block is None:
        batch_block = _pick_batch_block(N, C, HW)
    assert N % batch_block == 0
    bb = batch_block

    x3 = x_nchw.astype(jnp.float32).reshape(N, C, HW)     # free, contiguous reshape
    masks = _make_tap_masks(H, W, dilation)               # (9, HW), compile-time const

    # Only the MXU operands are cast; elementwise path and accumulation stay f32.
    wd_c = wd.astype(matmul_dtype)
    wc_c = wc.astype(matmul_dtype)
    wu_c = wu.astype(matmul_dtype)

    kernel = functools.partial(afdilation_kernel, W=W, d=dilation)
    rep2 = lambda shape: pl.BlockSpec(shape, lambda n: (0, 0))
    rep3 = lambda shape: pl.BlockSpec(shape, lambda n: (0, 0, 0))

    out3 = pl.pallas_call(
        kernel,
        out_shape=jax.ShapeDtypeStruct((N, C, HW), jnp.float32),
        grid=(N // bb,),
        in_specs=[
            pl.BlockSpec((bb, C, HW), lambda n: (n, 0, 0)),   # x (bb images per step)
            rep2((C, 1)), rep2((C, 1)),                       # BN1 scale / bias
            rep2((Cmid, C)), rep2((Cmid, 1)),                 # project-down (BN2 folded)
            rep3((9, Cmid, Cmid)), rep2((Cmid, 1)),           # dilated conv taps (BN3 folded)
            rep2((C, Cmid)), rep2((C, 1)),                    # project-up
            rep2((9, HW)),                                    # boundary masks (hoisted)
        ],
        out_specs=pl.BlockSpec((bb, C, HW), lambda n: (n, 0, 0)),
        compiler_params=pltpu.CompilerParams(
            dimension_semantics=("parallel",),
            vmem_limit_bytes=32 * 1024 * 1024,   # explicit; safe on v5e/v6e/v7x
        ),
    )(x3, s1, b1, wd_c, bd, wc_c, bc, wu_c, bu, masks)

    # TODO(synk): add halo-based spatial (H) tiling for production AlphaFold sizes where
    # a whole image per block no longer fits the per-generation VMEM budget (v7x: 64 MiB).
    return out3.reshape(N, C, H, W)


def make_params(key, C):
    """Synthetic params with PyTorch layouts; returns (kernel-folded, raw-for-reference)."""
    Cmid = C // 2
    ks = jax.random.split(key, 18)
    eps = 1e-5

    def bn(kg, kb, km, kv, ch):
        gamma = 1.0 + 0.1 * jax.random.normal(kg, (ch,), jnp.float32)
        beta = 0.1 * jax.random.normal(kb, (ch,), jnp.float32)
        mean = 0.1 * jax.random.normal(km, (ch,), jnp.float32)
        var = jax.random.uniform(kv, (ch,), jnp.float32, 0.5, 1.5)
        scale = gamma / jnp.sqrt(var + eps)
        bias = beta - mean * scale
        return scale, bias

    s1, b1 = bn(ks[0], ks[1], ks[2], ks[3], C)
    s2, b2 = bn(ks[4], ks[5], ks[6], ks[7], Cmid)
    s3, b3 = bn(ks[8], ks[9], ks[10], ks[11], Cmid)

    wd = 0.2 * jax.random.normal(ks[12], (Cmid, C), jnp.float32)           # 1x1 (out, in)
    bd = 0.05 * jax.random.normal(ks[13], (Cmid,), jnp.float32)
    wc = 0.2 * jax.random.normal(ks[14], (Cmid, Cmid, 3, 3), jnp.float32)  # OIHW
    bc = 0.05 * jax.random.normal(ks[15], (Cmid,), jnp.float32)
    wu = 0.2 * jax.random.normal(ks[16], (C, Cmid), jnp.float32)           # 1x1 (out, in)
    bu = 0.05 * jax.random.normal(ks[17], (C,), jnp.float32)

    # Fold BN2 into project-down and BN3 into the dilated conv (inference BN is affine):
    wd_f = s2[:, None] * wd                                            # (Cmid, C)
    bd_f = (s2 * bd + b2)[:, None]                                     # (Cmid, 1)
    wc_taps = jnp.transpose(wc, (2, 3, 0, 1)).reshape(9, Cmid, Cmid)   # (kh*3+kw, O, I)
    wc_f = s3[None, :, None] * wc_taps                                 # (9, Cmid, Cmid)
    bc_f = (s3 * bc + b3)[:, None]                                     # (Cmid, 1)

    kernel_params = (s1[:, None], b1[:, None], wd_f, bd_f, wc_f, bc_f, wu, bu[:, None])
    ref_params = dict(s1=s1, b1=b1, s2=s2, b2=b2, s3=s3, b3=b3,
                      wd=wd, bd=bd, wc=wc, bc=bc, wu=wu, bu=bu)
    return kernel_params, ref_params


def reference(x, p, d):
    """Pure-JAX NCHW reference matching the PyTorch forward (inference-mode BN)."""
    bc4 = lambda v: v[None, :, None, None]
    h = _elu(x * bc4(p['s1']) + bc4(p['b1']))
    h = jnp.einsum('nchw,oc->nohw', h, p['wd'],
                   precision=lax.Precision.HIGHEST) + bc4(p['bd'])
    h = _elu(h * bc4(p['s2']) + bc4(p['b2']))
    h = lax.conv_general_dilated(h, p['wc'], window_strides=(1, 1),
                                 padding=[(d, d), (d, d)], rhs_dilation=(d, d),
                                 dimension_numbers=('NCHW', 'OIHW', 'NCHW'),
                                 precision=lax.Precision.HIGHEST) + bc4(p['bc'])
    h = _elu(h * bc4(p['s3']) + bc4(p['b3']))
    h = jnp.einsum('nchw,oc->nohw', h, p['wu'],
                   precision=lax.Precision.HIGHEST) + bc4(p['bu'])
    return h + x


if __name__ == "__main__":
    N, C, H, W = 2, 16, 16, 16
    dilation = 2

    key = jax.random.PRNGKey(0)
    kx, kp = jax.random.split(key)
    x = jax.random.normal(kx, (N, C, H, W), jnp.float32)              # NCHW, like PyTorch
    kernel_params, ref_params = make_params(kp, C)

    ref = reference(x, ref_params, dilation)

    # f32 MXU-operand path (all generations)
    run_f32 = jax.jit(functools.partial(afdilation_block, dilation=dilation))
    out = jax.block_until_ready(run_f32(x, kernel_params))
    assert out.shape == (N, C, H, W)
    err = float(jnp.max(jnp.abs(out - ref)))
    assert jnp.allclose(out, ref, rtol=2e-3, atol=2e-3), err

    # bf16 MXU-operand path (v6e/v7x): f32 elementwise + f32 accumulation, bf16 dots
    run_bf16 = jax.jit(functools.partial(afdilation_block, dilation=dilation,
                                         matmul_dtype=jnp.bfloat16))
    out_bf16 = jax.block_until_ready(run_bf16(x, kernel_params))
    err_bf16 = float(jnp.max(jnp.abs(out_bf16 - ref)))
    assert jnp.allclose(out_bf16, ref, rtol=3e-2, atol=3e-2), err_bf16

    print("KERNEL_OK")
</pallas_src>

<mosaic_0001>
module attributes {stable_mosaic.version = 11 : i64} {
  func.func @afdilation_kernel(%arg0: i32, %arg1: memref<1x16x256xf32, #tpu.memory_space<vmem>>, %arg2: memref<16x1xf32, #tpu.memory_space<vmem>>, %arg3: memref<16x1xf32, #tpu.memory_space<vmem>>, %arg4: memref<8x16xf32, #tpu.memory_space<vmem>>, %arg5: memref<8x1xf32, #tpu.memory_space<vmem>>, %arg6: memref<9x8x8xf32, #tpu.memory_space<vmem>>, %arg7: memref<8x1xf32, #tpu.memory_space<vmem>>, %arg8: memref<16x8xf32, #tpu.memory_space<vmem>>, %arg9: memref<16x1xf32, #tpu.memory_space<vmem>>, %arg10: memref<9x256xf32, #tpu.memory_space<vmem>>, %arg11: memref<1x16x256xf32, #tpu.memory_space<vmem>>) attributes {dimension_semantics = [#tpu.dimension_semantics<parallel>], iteration_bounds = array<i64: 2>, scalar_prefetch = 0 : i64, scratch_operands = 0 : i64, tpu.core_type = #tpu.core_type<tc>, window_params = [{transform_indices = @transform_0, window_bounds = array<i64: 1, 16, 256>}, {pipeline_mode = #tpu.pipeline_mode<synchronous>, transform_indices = @transform_1, window_bounds = array<i64: 16, 1>}, {pipeline_mode = #tpu.pipeline_mode<synchronous>, transform_indices = @transform_2, window_bounds = array<i64: 16, 1>}, {pipeline_mode = #tpu.pipeline_mode<synchronous>, transform_indices = @transform_3, window_bounds = array<i64: 8, 16>}, {pipeline_mode = #tpu.pipeline_mode<synchronous>, transform_indices = @transform_4, window_bounds = array<i64: 8, 1>}, {pipeline_mode = #tpu.pipeline_mode<synchronous>, transform_indices = @transform_5, window_bounds = array<i64: 9, 8, 8>}, {pipeline_mode = #tpu.pipeline_mode<synchronous>, transform_indices = @transform_6, window_bounds = array<i64: 8, 1>}, {pipeline_mode = #tpu.pipeline_mode<synchronous>, transform_indices = @transform_7, window_bounds = array<i64: 16, 8>}, {pipeline_mode = #tpu.pipeline_mode<synchronous>, transform_indices = @transform_8, window_bounds = array<i64: 16, 1>}, {pipeline_mode = #tpu.pipeline_mode<synchronous>, transform_indices = @transform_9, window_bounds = array<i64: 9, 256>}, {transform_indices = @transform_10, window_bounds = array<i64: 1, 16, 256>}]} {
    %c0 = arith.constant 0 : index
    %c0_0 = arith.constant 0 : index
    %0 = vector.load %arg2[%c0, %c0_0] : memref<16x1xf32, #tpu.memory_space<vmem>>, vector<16x1xf32>
    %c0_1 = arith.constant 0 : index
    %c0_2 = arith.constant 0 : index
    %1 = vector.load %arg3[%c0_1, %c0_2] : memref<16x1xf32, #tpu.memory_space<vmem>>, vector<16x1xf32>
    %c0_3 = arith.constant 0 : index
    %c0_4 = arith.constant 0 : index
    %2 = vector.load %arg4[%c0_3, %c0_4] : memref<8x16xf32, #tpu.memory_space<vmem>>, vector<8x16xf32>
    %c0_5 = arith.constant 0 : index
    %c0_6 = arith.constant 0 : index
    %3 = vector.load %arg5[%c0_5, %c0_6] : memref<8x1xf32, #tpu.memory_space<vmem>>, vector<8x1xf32>
    %c0_7 = arith.constant 0 : index
    %c0_8 = arith.constant 0 : index
    %c0_9 = arith.constant 0 : index
    %4 = vector.load %arg6[%c0_7, %c0_8, %c0_9] : memref<9x8x8xf32, #tpu.memory_space<vmem>>, vector<9x8x8xf32>
    %c0_10 = arith.constant 0 : index
    %c0_11 = arith.constant 0 : index
    %5 = vector.load %arg7[%c0_10, %c0_11] : memref<8x1xf32, #tpu.memory_space<vmem>>, vector<8x1xf32>
    %c0_12 = arith.constant 0 : index
    %c0_13 = arith.constant 0 : index
    %6 = vector.load %arg8[%c0_12, %c0_13] : memref<16x8xf32, #tpu.memory_space<vmem>>, vector<16x8xf32>
    %c0_14 = arith.constant 0 : index
    %c0_15 = arith.constant 0 : index
    %7 = vector.load %arg9[%c0_14, %c0_15] : memref<16x1xf32, #tpu.memory_space<vmem>>, vector<16x1xf32>
    %c0_16 = arith.constant 0 : index
    %c0_17 = arith.constant 0 : index
    %8 = vector.load %arg10[%c0_16, %c0_17] : memref<9x256xf32, #tpu.memory_space<vmem>>, vector<9x256xf32>
    %c0_18 = arith.constant 0 : index
    %c0_19 = arith.constant 0 : index
    %c0_20 = arith.constant 0 : index
    %9 = vector.load %arg1[%c0_18, %c0_19, %c0_20] : memref<1x16x256xf32, #tpu.memory_space<vmem>>, vector<1x16x256xf32>
    %10 = vector.shape_cast %9 : vector<1x16x256xf32> to vector<16x256xf32>
    %11 = vector.broadcast %0 : vector<16x1xf32> to vector<16x256xf32>
    %12 = arith.mulf %10, %11 : vector<16x256xf32>
    %13 = vector.broadcast %1 : vector<16x1xf32> to vector<16x256xf32>
    %14 = arith.addf %12, %13 : vector<16x256xf32>
    %cst = arith.constant 0.000000e+00 : f32
    %15 = vector.broadcast %cst : f32 to vector<16x256xf32>
    %16 = arith.cmpf ogt, %14, %15 : vector<16x256xf32>
    %cst_21 = arith.constant 0.000000e+00 : f32
    %17 = vector.broadcast %cst_21 : f32 to vector<16x256xf32>
    %18 = arith.minimumf %14, %17 : vector<16x256xf32>
    %19 = math.exp %18 : vector<16x256xf32>
    %cst_22 = arith.constant 1.000000e+00 : f32
    %20 = vector.broadcast %cst_22 : f32 to vector<16x256xf32>
    %21 = arith.subf %19, %20 : vector<16x256xf32>
    %22 = arith.select %16, %14, %21 : vector<16x256xi1>, vector<16x256xf32>
    %cst_23 = arith.constant dense<0.000000e+00> : vector<8x256xf32>
    %23 = tpu.matmul %2, %22, %cst_23 {dimension_numbers = #tpu.dot_dimension_numbers<[1], [0], [0], [1], [0, 0, 1, 1], [], []>} : vector<8x16xf32>, vector<16x256xf32>, vector<8x256xf32> -> vector<8x256xf32>
    %24 = vector.broadcast %3 : vector<8x1xf32> to vector<8x256xf32>
    %25 = arith.addf %23, %24 : vector<8x256xf32>
    %cst_24 = arith.constant 0.000000e+00 : f32
    %26 = vector.broadcast %cst_24 : f32 to vector<8x256xf32>
    %27 = arith.cmpf ogt, %25, %26 : vector<8x256xf32>
    %cst_25 = arith.constant 0.000000e+00 : f32
    %28 = vector.broadcast %cst_25 : f32 to vector<8x256xf32>
    %29 = arith.minimumf %25, %28 : vector<8x256xf32>
    %30 = math.exp %29 : vector<8x256xf32>
    %cst_26 = arith.constant 1.000000e+00 : f32
    %31 = vector.broadcast %cst_26 : f32 to vector<8x256xf32>
    %32 = arith.subf %30, %31 : vector<8x256xf32>
    %33 = arith.select %27, %25, %32 : vector<8x256xi1>, vector<8x256xf32>
    %c34_i32 = arith.constant 34 : i32
    %34 = tpu.dynamic_rotate %33 by %c34_i32 dim 1 : vector<8x256xf32>, i32 -> vector<8x256xf32>
    %35 = vector.extract_strided_slice %8 {offsets = [0, 0], sizes = [1, 256], strides = [1, 1]} : vector<9x256xf32> to vector<1x256xf32>
    %36 = vector.broadcast %35 : vector<1x256xf32> to vector<8x256xf32>
    %37 = arith.mulf %34, %36 : vector<8x256xf32>
    %38 = vector.extract_strided_slice %4 {offsets = [0, 0, 0], sizes = [1, 8, 8], strides = [1, 1, 1]} : vector<9x8x8xf32> to vector<1x8x8xf32>
    %39 = vector.shape_cast %38 : vector<1x8x8xf32> to vector<8x8xf32>
    %cst_27 = arith.constant dense<0.000000e+00> : vector<8x256xf32>
    %40 = tpu.matmul %39, %37, %cst_27 {dimension_numbers = #tpu.dot_dimension_numbers<[1], [0], [0], [1], [0, 0, 1, 1], [], []>} : vector<8x8xf32>, vector<8x256xf32>, vector<8x256xf32> -> vector<8x256xf32>
    %c32_i32 = arith.constant 32 : i32
    %41 = tpu.dynamic_rotate %33 by %c32_i32 dim 1 : vector<8x256xf32>, i32 -> vector<8x256xf32>
    %42 = vector.extract_strided_slice %8 {offsets = [1, 0], sizes = [1, 256], strides = [1, 1]} : vector<9x256xf32> to vector<1x256xf32>
    %43 = vector.broadcast %42 : vector<1x256xf32> to vector<8x256xf32>
    %44 = arith.mulf %41, %43 : vector<8x256xf32>
    %45 = vector.extract_strided_slice %4 {offsets = [1, 0, 0], sizes = [1, 8, 8], strides = [1, 1, 1]} : vector<9x8x8xf32> to vector<1x8x8xf32>
    %46 = vector.shape_cast %45 : vector<1x8x8xf32> to vector<8x8xf32>
    %cst_28 = arith.constant dense<0.000000e+00> : vector<8x256xf32>
    %47 = tpu.matmul %46, %44, %cst_28 {dimension_numbers = #tpu.dot_dimension_numbers<[1], [0], [0], [1], [0, 0, 1, 1], [], []>} : vector<8x8xf32>, vector<8x256xf32>, vector<8x256xf32> -> vector<8x256xf32>
    %48 = arith.addf %40, %47 : vector<8x256xf32>
    %c30_i32 = arith.constant 30 : i32
    %49 = tpu.dynamic_rotate %33 by %c30_i32 dim 1 : vector<8x256xf32>, i32 -> vector<8x256xf32>
    %50 = vector.extract_strided_slice %8 {offsets = [2, 0], sizes = [1, 256], strides = [1, 1]} : vector<9x256xf32> to vector<1x256xf32>
    %51 = vector.broadcast %50 : vector<1x256xf32> to vector<8x256xf32>
    %52 = arith.mulf %49, %51 : vector<8x256xf32>
    %53 = vector.extract_strided_slice %4 {offsets = [2, 0, 0], sizes = [1, 8, 8], strides = [1, 1, 1]} : vector<9x8x8xf32> to vector<1x8x8xf32>
    %54 = vector.shape_cast %53 : vector<1x8x8xf32> to vector<8x8xf32>
    %cst_29 = arith.constant dense<0.000000e+00> : vector<8x256xf32>
    %55 = tpu.matmul %54, %52, %cst_29 {dimension_numbers = #tpu.dot_dimension_numbers<[1], [0], [0], [1], [0, 0, 1, 1], [], []>} : vector<8x8xf32>, vector<8x256xf32>, vector<8x256xf32> -> vector<8x256xf32>
    %56 = arith.addf %48, %55 : vector<8x256xf32>
    %c2_i32 = arith.constant 2 : i32
    %57 = tpu.dynamic_rotate %33 by %c2_i32 dim 1 : vector<8x256xf32>, i32 -> vector<8x256xf32>
    %58 = vector.extract_strided_slice %8 {offsets = [3, 0], sizes = [1, 256], strides = [1, 1]} : vector<9x256xf32> to vector<1x256xf32>
    %59 = vector.broadcast %58 : vector<1x256xf32> to vector<8x256xf32>
    %60 = arith.mulf %57, %59 : vector<8x256xf32>
    %61 = vector.extract_strided_slice %4 {offsets = [3, 0, 0], sizes = [1, 8, 8], strides = [1, 1, 1]} : vector<9x8x8xf32> to vector<1x8x8xf32>
    %62 = vector.shape_cast %61 : vector<1x8x8xf32> to vector<8x8xf32>
    %cst_30 = arith.constant dense<0.000000e+00> : vector<8x256xf32>
    %63 = tpu.matmul %62, %60, %cst_30 {dimension_numbers = #tpu.dot_dimension_numbers<[1], [0], [0], [1], [0, 0, 1, 1], [], []>} : vector<8x8xf32>, vector<8x256xf32>, vector<8x256xf32> -> vector<8x256xf32>
    %64 = arith.addf %56, %63 : vector<8x256xf32>
    %65 = vector.extract_strided_slice %8 {offsets = [4, 0], sizes = [1, 256], strides = [1, 1]} : vector<9x256xf32> to vector<1x256xf32>
    %66 = vector.broadcast %65 : vector<1x256xf32> to vector<8x256xf32>
    %67 = arith.mulf %33, %66 : vector<8x256xf32>
    %68 = vector.extract_strided_slice %4 {offsets = [4, 0, 0], sizes = [1, 8, 8], strides = [1, 1, 1]} : vector<9x8x8xf32> to vector<1x8x8xf32>
    %69 = vector.shape_cast %68 : vector<1x8x8xf32> to vector<8x8xf32>
    %cst_31 = arith.constant dense<0.000000e+00> : vector<8x256xf32>
    %70 = tpu.matmul %69, %67, %cst_31 {dimension_numbers = #tpu.dot_dimension_numbers<[1], [0], [0], [1], [0, 0, 1, 1], [], []>} : vector<8x8xf32>, vector<8x256xf32>, vector<8x256xf32> -> vector<8x256xf32>
    %71 = arith.addf %64, %70 : vector<8x256xf32>
    %c254_i32 = arith.constant 254 : i32
    %72 = tpu.dynamic_rotate %33 by %c254_i32 dim 1 : vector<8x256xf32>, i32 -> vector<8x256xf32>
    %73 = vector.extract_strided_slice %8 {offsets = [5, 0], sizes = [1, 256], strides = [1, 1]} : vector<9x256xf32> to vector<1x256xf32>
    %74 = vector.broadcast %73 : vector<1x256xf32> to vector<8x256xf32>
    %75 = arith.mulf %72, %74 : vector<8x256xf32>
    %76 = vector.extract_strided_slice %4 {offsets = [5, 0, 0], sizes = [1, 8, 8], strides = [1, 1, 1]} : vector<9x8x8xf32> to vector<1x8x8xf32>
    %77 = vector.shape_cast %76 : vector<1x8x8xf32> to vector<8x8xf32>
    %cst_32 = arith.constant dense<0.000000e+00> : vector<8x256xf32>
    %78 = tpu.matmul %77, %75, %cst_32 {dimension_numbers = #tpu.dot_dimension_numbers<[1], [0], [0], [1], [0, 0, 1, 1], [], []>} : vector<8x8xf32>, vector<8x256xf32>, vector<8x256xf32> -> vector<8x256xf32>
    %79 = arith.addf %71, %78 : vector<8x256xf32>
    %c226_i32 = arith.constant 226 : i32
    %80 = tpu.dynamic_rotate %33 by %c226_i32 dim 1 : vector<8x256xf32>, i32 -> vector<8x256xf32>
    %81 = vector.extract_strided_slice %8 {offsets = [6, 0], sizes = [1, 256], strides = [1, 1]} : vector<9x256xf32> to vector<1x256xf32>
    %82 = vector.broadcast %81 : vector<1x256xf32> to vector<8x256xf32>
    %83 = arith.mulf %80, %82 : vector<8x256xf32>
    %84 = vector.extract_strided_slice %4 {offsets = [6, 0, 0], sizes = [1, 8, 8], strides = [1, 1, 1]} : vector<9x8x8xf32> to vector<1x8x8xf32>
    %85 = vector.shape_cast %84 : vector<1x8x8xf32> to vector<8x8xf32>
    %cst_33 = arith.constant dense<0.000000e+00> : vector<8x256xf32>
    %86 = tpu.matmul %85, %83, %cst_33 {dimension_numbers = #tpu.dot_dimension_numbers<[1], [0], [0], [1], [0, 0, 1, 1], [], []>} : vector<8x8xf32>, vector<8x256xf32>, vector<8x256xf32> -> vector<8x256xf32>
    %87 = arith.addf %79, %86 : vector<8x256xf32>
    %c224_i32 = arith.constant 224 : i32
    %88 = tpu.dynamic_rotate %33 by %c224_i32 dim 1 : vector<8x256xf32>, i32 -> vector<8x256xf32>
    %89 = vector.extract_strided_slice %8 {offsets = [7, 0], sizes = [1, 256], strides = [1, 1]} : vector<9x256xf32> to vector<1x256xf32>
    %90 = vector.broadcast %89 : vector<1x256xf32> to vector<8x256xf32>
    %91 = arith.mulf %88, %90 : vector<8x256xf32>
    %92 = vector.extract_strided_slice %4 {offsets = [7, 0, 0], sizes = [1, 8, 8], strides = [1, 1, 1]} : vector<9x8x8xf32> to vector<1x8x8xf32>
    %93 = vector.shape_cast %92 : vector<1x8x8xf32> to vector<8x8xf32>
    %cst_34 = arith.constant dense<0.000000e+00> : vector<8x256xf32>
    %94 = tpu.matmul %93, %91, %cst_34 {dimension_numbers = #tpu.dot_dimension_numbers<[1], [0], [0], [1], [0, 0, 1, 1], [], []>} : vector<8x8xf32>, vector<8x256xf32>, vector<8x256xf32> -> vector<8x256xf32>
    %95 = arith.addf %87, %94 : vector<8x256xf32>
    %c222_i32 = arith.constant 222 : i32
    %96 = tpu.dynamic_rotate %33 by %c222_i32 dim 1 : vector<8x256xf32>, i32 -> vector<8x256xf32>
    %97 = vector.extract_strided_slice %8 {offsets = [8, 0], sizes = [1, 256], strides = [1, 1]} : vector<9x256xf32> to vector<1x256xf32>
    %98 = vector.broadcast %97 : vector<1x256xf32> to vector<8x256xf32>
    %99 = arith.mulf %96, %98 : vector<8x256xf32>
    %100 = vector.extract_strided_slice %4 {offsets = [8, 0, 0], sizes = [1, 8, 8], strides = [1, 1, 1]} : vector<9x8x8xf32> to vector<1x8x8xf32>
    %101 = vector.shape_cast %100 : vector<1x8x8xf32> to vector<8x8xf32>
    %cst_35 = arith.constant dense<0.000000e+00> : vector<8x256xf32>
    %102 = tpu.matmul %101, %99, %cst_35 {dimension_numbers = #tpu.dot_dimension_numbers<[1], [0], [0], [1], [0, 0, 1, 1], [], []>} : vector<8x8xf32>, vector<8x256xf32>, vector<8x256xf32> -> vector<8x256xf32>
    %103 = arith.addf %95, %102 : vector<8x256xf32>
    %104 = vector.broadcast %5 : vector<8x1xf32> to vector<8x256xf32>
    %105 = arith.addf %103, %104 : vector<8x256xf32>
    %cst_36 = arith.constant 0.000000e+00 : f32
    %106 = vector.broadcast %cst_36 : f32 to vector<8x256xf32>
    %107 = arith.cmpf ogt, %105, %106 : vector<8x256xf32>
    %cst_37 = arith.constant 0.000000e+00 : f32
    %108 = vector.broadcast %cst_37 : f32 to vector<8x256xf32>
    %109 = arith.minimumf %105, %108 : vector<8x256xf32>
    %110 = math.exp %109 : vector<8x256xf32>
    %cst_38 = arith.constant 1.000000e+00 : f32
    %111 = vector.broadcast %cst_38 : f32 to vector<8x256xf32>
    %112 = arith.subf %110, %111 : vector<8x256xf32>
    %113 = arith.select %107, %105, %112 : vector<8x256xi1>, vector<8x256xf32>
    %cst_39 = arith.constant dense<0.000000e+00> : vector<16x256xf32>
    %114 = tpu.matmul %6, %113, %cst_39 {dimension_numbers = #tpu.dot_dimension_numbers<[1], [0], [0], [1], [0, 0, 1, 1], [], []>} : vector<16x8xf32>, vector<8x256xf32>, vector<16x256xf32> -> vector<16x256xf32>
    %115 = vector.broadcast %7 : vector<16x1xf32> to vector<16x256xf32>
    %116 = arith.addf %114, %115 : vector<16x256xf32>
    %c0_40 = arith.constant 0 : index
    %c0_41 = arith.constant 0 : index
    %c0_42 = arith.constant 0 : index
    %117 = vector.load %arg1[%c0_40, %c0_41, %c0_42] : memref<1x16x256xf32, #tpu.memory_space<vmem>>, vector<1x16x256xf32>
    %118 = vector.shape_cast %117 : vector<1x16x256xf32> to vector<16x256xf32>
    %119 = arith.addf %116, %118 : vector<16x256xf32>
    %c0_43 = arith.constant 0 : index
    %c0_44 = arith.constant 0 : index
    %c0_45 = arith.constant 0 : index
    %120 = vector.load %arg11[%c0_43, %c0_44, %c0_45] : memref<1x16x256xf32, #tpu.memory_space<vmem>>, vector<1x16x256xf32>
    %121 = vector.shape_cast %120 : vector<1x16x256xf32> to vector<16x256xf32>
    %122 = vector.shape_cast %119 : vector<16x256xf32> to vector<1x16x256xf32>
    tpu.vector_store %arg11[%c0_43, %c0_44, %c0_45], %122 {strides = array<i32>} : memref<1x16x256xf32, #tpu.memory_space<vmem>>, vector<1x16x256xf32>,
    return
  }
  func.func @transform_0(%arg0: i32) -> (i32, i32, i32) {
    %c0_i32 = arith.constant 0 : i32
    %c0_i32_0 = arith.constant 0 : i32
    %c0_i32_1 = arith.constant 0 : i32
    return %arg0, %c0_i32, %c0_i32_0 : i32, i32, i32
  }
  func.func @transform_1(%arg0: i32) -> (i32, i32) {
    %c0_i32 = arith.constant 0 : i32
    %c0_i32_0 = arith.constant 0 : i32
    %c0_i32_1 = arith.constant 0 : i32
    return %c0_i32, %c0_i32_0 : i32, i32
  }
  func.func @transform_2(%arg0: i32) -> (i32, i32) {
    %c0_i32 = arith.constant 0 : i32
    %c0_i32_0 = arith.constant 0 : i32
    %c0_i32_1 = arith.constant 0 : i32
    return %c0_i32, %c0_i32_0 : i32, i32
  }
  func.func @transform_3(%arg0: i32) -> (i32, i32) {
    %c0_i32 = arith.constant 0 : i32
    %c0_i32_0 = arith.constant 0 : i32
    %c0_i32_1 = arith.constant 0 : i32
    return %c0_i32, %c0_i32_0 : i32, i32
  }
  func.func @transform_4(%arg0: i32) -> (i32, i32) {
    %c0_i32 = arith.constant 0 : i32
    %c0_i32_0 = arith.constant 0 : i32
    %c0_i32_1 = arith.constant 0 : i32
    return %c0_i32, %c0_i32_0 : i32, i32
  }
  func.func @transform_5(%arg0: i32) -> (i32, i32, i32) {
    %c0_i32 = arith.constant 0 : i32
    %c0_i32_0 = arith.constant 0 : i32
    %c0_i32_1 = arith.constant 0 : i32
    %c0_i32_2 = arith.constant 0 : i32
    return %c0_i32, %c0_i32_0, %c0_i32_1 : i32, i32, i32
  }
  func.func @transform_6(%arg0: i32) -> (i32, i32) {
    %c0_i32 = arith.constant 0 : i32
    %c0_i32_0 = arith.constant 0 : i32
    %c0_i32_1 = arith.constant 0 : i32
    return %c0_i32, %c0_i32_0 : i32, i32
  }
  func.func @transform_7(%arg0: i32) -> (i32, i32) {
    %c0_i32 = arith.constant 0 : i32
    %c0_i32_0 = arith.constant 0 : i32
    %c0_i32_1 = arith.constant 0 : i32
    return %c0_i32, %c0_i32_0 : i32, i32
  }
  func.func @transform_8(%arg0: i32) -> (i32, i32) {
    %c0_i32 = arith.constant 0 : i32
    %c0_i32_0 = arith.constant 0 : i32
    %c0_i32_1 = arith.constant 0 : i32
    return %c0_i32, %c0_i32_0 : i32, i32
  }
  func.func @transform_9(%arg0: i32) -> (i32, i32) {
    %c0_i32 = arith.constant 0 : i32
    %c0_i32_0 = arith.constant 0 : i32
    %c0_i32_1 = arith.constant 0 : i32
    return %c0_i32, %c0_i32_0 : i32, i32
  }
  func.func @transform_10(%arg0: i32) -> (i32, i32, i32) {
    %c0_i32 = arith.constant 0 : i32
    %c0_i32_0 = arith.constant 0 : i32
    %c0_i32_1 = arith.constant 0 : i32
    return %arg0, %c0_i32, %c0_i32_0 : i32, i32, i32
  }
}

</mosaic_0001>

<bundles_post_ra>
// kernel: afdilation_block.1
= control target key start
LH: loop header
LB: loop body
LE: loop exit
PB: predicated region body
PF: predicated region fallthrough
CT: control target
= control target key end

     0   :  { %s1680_s13 = smov 0   ;;  %s1885_s0 = inlined_call_operand.vmem [shape: f32[2,16,256], index: 0, kind: input, shape index: {}]   ;;  %s1886_s1 = inlined_call_operand.vmem [shape: f32[16,1], index: 1, kind: input, shape index: {}]   ;;  %s1887_s2 = inlined_call_operand.vmem [shape: f32[16,1], index: 2, kind: input, shape index: {}]   ;;  %s1888_s3 = inlined_call_operand.vmem [shape: f32[8,16], index: 3, kind: input, shape index: {}]   ;;  %s1889_s4 = inlined_call_operand.vmem [shape: f32[8,1], index: 4, kind: input, shape index: {}]   ;;  %s1890_s5 = inlined_call_operand.vmem [shape: f32[9,8,8], index: 5, kind: input, shape index: {}]   ;;  %s1891_s6 = inlined_call_operand.vmem [shape: f32[8,1], index: 6, kind: input, shape index: {}]   ;;  %s1892_s7 = inlined_call_operand.vmem [shape: f32[16,8], index: 7, kind: input, shape index: {}]   ;;  %s1893_s8 = inlined_call_operand.vmem [shape: f32[16,1], index: 8, kind: input, shape index: {}]   ;;  %s1894_s9 = inlined_call_operand.vmem [shape: f32[9,256], index: 9, kind: input, shape index: {}]   ;;  %s1895_s10 = inlined_call_operand.vmem [shape: f32[2,16,256], index: 10, kind: output, shape index: {}]  }
   0x1 LB: > { %s1536_s14 = sadd.s32 4294967295, %s1613_s13   ;;  %p1540_p0 = scmp.ge.s32.totalorder %s1613_s13, 1  ;;  %s1613_s13 = sphi %s1680_s13, %s20_s13  }
   0x2   : > { %p312_p1 = scmp.lt.s32.totalorder %s1613_s13, 3 }
   0x4   : > { %p313_p2 = pnand %p1540_p0, %p312_p1 }
   0x5   : > { %p350_p3 = scmp.lt.s32.totalorder (!%p313_p2), %s1536_s14, 1  ;;  %s1617_s11 = smov (!%p313_p2), 32  }
   0x6   : > { %316 = sbr.rel (%p313_p2) target bundleno = 961 (0x3c1), region = 60  ;;  %s1618_s12 = smov (!%p313_p2), 34  }
   0x7   : > { %s1619_s15 = smov (!%p313_p2), 30   ;;  %s1620_s16 = smov (!%p313_p2), 2  }
   0x8   : > { %s1621_s17 = smov (!%p313_p2), 126   ;;  %s1622_s18 = smov (!%p313_p2), 98  }
   0x9   : > { %s1623_s19 = smov (!%p313_p2), 96   ;;  %s1624_s20 = smov (!%p313_p2), 94  }
   0xb   : > { %v363_v0 = vld [vmem:[%s1887_s2 + $0x8] sm:$0xff]  ;;  %v1615_v2 = vmov 0   ;;  %v362_v3 = vld [vmem:[%s1887_s2] sm:$0xff]  ;;  %v1616_v6 = vmov 0.0   ;;  %s1897_s14 = smov (!%p350_p3, %s1536_s14), 1  ;;  %vm445_vm4 = vcmask 130048   ;;  %v536_v62 = vlaneseq }
   0xc   : > { %v361_v1 = vld [vmem:[%s1886_s1 + $0x8] sm:$0xff]  ;;  %1590 = vset.pattern.permute.xlu1 %v1615_v2  ;;  %1589 = vset.pattern.permute.xlu0 %v1615_v2  ;;  %v360_v4 = vld [vmem:[%s1886_s1] sm:$0xff]  ;;  %s1569_s25 = sshll.u32 %s1897_s14, 5  ;;  %vm568_vm9 = vcmask 64512  }
   0xd   : > { %409 = vperm.xlu1 %1590, %v363_v0   ;;  %395 = vperm.xlu0 %1589, %v361_v1   ;;  %v365_v5 = vld [vmem:[%s1889_s4] sm:$0xff]  ;;  %s354_s28 = scalar_lea.vmem %s1885_s0, %s1569_s25  ;;  %v379_v61 = vld [vmem:[%s1893_s8 + $0x8] sm:$0xff]  ;;  %v1758_v63 = vshrl.u32 %v536_v62, 7  ;;  %v1760_v0 = vand.u32 127, %v536_v62  ;;  %s359_s26 = scalar_lea.vmem %s1895_s10, %s1569_s25 }
   0xe   : > { %513 = vmatprep.mubr.f32.mxu0 %v1616_v6  ;;  %710 = vmatprep.mubr.f32.mxu1 %v1616_v6  ;;  %v1713_v7 = vld [vmem:[%s354_s28 + $0x10] sm:$0xff]  ;;  %v1715_v8 = vld [vmem:[%s354_s28 + $0x18] sm:$0xff]  ;;  %v1719_v13 = vld [vmem:[%s354_s28] sm:$0xff] }
   0xf   : > { %v1721_v14 = vld [vmem:[%s354_s28 + $0x8] sm:$0xff]  ;;  %v364_v43 = vld [vmem:[%s1888_s3] sm:$0xff]  ;;  %v560_v1 = vsub.s32 1, %v1758_v63  ;;  %vm555_vm7 = vcmp.lt.s32.totalorder %v1760_v0, 32  ;;  %vm538_vm8 = vcmp.lt.s32.totalorder %v1760_v0, 34  ;;  %vm721_vm10 = vcmp.lt.s32.totalorder %v1760_v0, 30 }
  0x10   : > { %v375_v59 = vld [vmem:[%s1891_s6] sm:$0xff]  ;;  %vm814_vm11 = vcmp.lt.s32.totalorder %v1760_v0, 2  ;;  %vm993_vm12 = vcmp.lt.s32.totalorder %v1760_v0, 126  ;;  %vm1086_vm13 = vcmp.lt.s32.totalorder %v1760_v0, 98  ;;  %vm1179_vm14 = vcmp.lt.s32.totalorder %v1760_v0, 96 }
  0x11   : > { %404 = vperm.xlu1 %1590, %v362_v3   ;;  %390 = vperm.xlu0 %1589, %v360_v4   ;;  %v378_v60 = vld [vmem:[%s1893_s8] sm:$0xff]  ;;  %v1771_v3 = vld [vmem:[%s1894_s9 + $0x8] sm:$0xff]  ;;  %vm1272_vm15 = vcmp.lt.s32.totalorder %v1760_v0, 94 }
  0x12   : > { %v1766_v2 = vld [vmem:[%s1894_s9] sm:$0xff] }
  0x15   : > { %442 = vperm.xlu0 %1589, %v365_v5   ;;  %v561_v5 = vrot.slane %v1766_v2, %v560_v1 }
  0x88   : > { %v410_v9 = vpop.permute.xlu1 %409  ;;  %v396_v10 = vpop.permute.xlu0 %395 }
  0x89   : > { %v400_v11 = vmul.f32 %v396_v10, %v1713_v7  ;;  %v401_v12 = vmul.f32 %v396_v10, %v1715_v8  ;;  %v543_v10 = vsub.s32 0, %v1758_v63 }
  0x8b   : > { %v414_v15 = vadd.f32 %v410_v9, %v400_v11  ;;  %v415_v16 = vadd.f32 %v410_v9, %v401_v12  ;;  %v565_v9 = vrot.slane %v1771_v3, %v560_v1 }
  0x8c   : > { %v391_v17 = vpop.permute.xlu0 %390  ;;  %v405_v22 = vpop.permute.xlu1 %404 }
  0x8d   : > { %v422_v18 = vmin.f32 %v414_v15, 0.0  ;;  %v423_v19 = vmin.f32 %v415_v16, 0.0  ;;  %v398_v20 = vmul.f32 %v391_v17, %v1719_v13  ;;  %v399_v21 = vmul.f32 %v391_v17, %v1721_v14 }
  0x8e   : > { %vm419_vm0 = vcmp.gt.f32.partialorder %v415_v16, 0.0  ;;  %vm418_vm1 = vcmp.gt.f32.partialorder %v414_v15, 0.0 }
  0x8f   : > { %v428_v23 = vmul.f32 1.442695, %v422_v18  ;;  %v412_v24 = vadd.f32 %v405_v22, %v398_v20  ;;  %v413_v25 = vadd.f32 %v405_v22, %v399_v21  ;;  %v430_v26 = vmul.f32 1.442695, %v423_v19  ;;  %v367_v22 = vld [vmem:[%s1890_s5 + $0x8] sm:$0xff] }
  0x90   : > { %v443_v44 = vpop.permute.xlu0 %442  ;;  %v548_v20 = vrot.slane %v1771_v3, %v543_v10  ;;  %v544_v21 = vrot.slane %v1766_v2, %v543_v10  ;;  %v1184_v10 = vsub.s32 7, %v1758_v63 }
  0x91   : > { %v420_v27 = vmin.f32 %v412_v24, 0.0  ;;  %v421_v28 = vmin.f32 %v413_v25, 0.0  ;;  %1591 = vpow2.f32 %v430_v26  ;;  %vm416_vm2 = vcmp.gt.f32.partialorder %v412_v24, 0.0 }
  0x92   : > { %1593 = vpow2.f32 %v428_v23  ;;  %vm417_vm3 = vcmp.gt.f32.partialorder %v413_v25, 0.0 }
  0x93   : > { %v424_v29 = vmul.f32 1.442695, %v420_v27  ;;  %v426_v30 = vmul.f32 1.442695, %v421_v28 }
  0x95   : > { %1595 = vpow2.f32 %v424_v29 }
  0x96   : > { %1597 = vpow2.f32 %v426_v30 }
  0x9e   : > { %v1592_v31 = vpop.eup %1591 }
  0x9f   : > { %v1594_v32 = vpop.eup %1593  ;;  %v1548_v33 = vadd.f32 -1.0, %v1592_v31 }
  0xa0   : > { %v1547_v34 = vadd.f32 -1.0, %v1594_v32  ;;  %v819_v32 = vsub.s32 3, %v1758_v63 }
  0xa1   : > { %v439_v35 = vsel %vm419_vm0, %v415_v16, %v1548_v33  ;;  %v726_v16 = vsub.s32 2, %v1758_v63  ;;  %v366_v33 = vld [vmem:[%s1890_s5] sm:$0xff] }
  0xa2   : > { %v1596_v36 = vpop.eup %1595  ;;  %477 = vmatprep.subr.mxu0 %v439_v35  ;;  %v438_v37 = vsel %vm418_vm1, %v414_v15, %v1547_v34 }
  0xa3   : > { %v1598_v38 = vpop.eup %1597  ;;  %478 = vmatpush1.msra.mxu0 %v438_v37  ;;  %v1545_v39 = vadd.f32 -1.0, %v1596_v36  ;;  %v727_v26 = vrot.slane %v1766_v2, %v726_v16  ;;  %v731_v29 = vrot.slane %v1771_v3, %v726_v16 }
  0xa4   : > { %v1546_v40 = vadd.f32 -1.0, %v1598_v38 }
  0xa5   : > { %v436_v41 = vsel %vm416_vm2, %v412_v24, %v1545_v39  ;;  %v905_v24 = vsub.s32 4, %v1758_v63  ;;  %v998_v39 = vsub.s32 5, %v1758_v63 }
  0xa6   : > { %v437_v42 = vsel %vm417_vm3, %v413_v25, %v1546_v40 }
  0xa7   : > { %479 = vmatprep.subr.mxu0 %v437_v42  ;;  %v910_v35 = vrot.slane %v1771_v3, %v905_v24  ;;  %v906_v36 = vrot.slane %v1766_v2, %v905_v24 }
  0xa8   : > { %480 = vmatpush1.msra.mxu0 %v436_v41 }
  0xa9   : > { %1549 = vmatmul.mubr.msk.f32.vlgmr.msra.gmra.mxu0 %vm445_vm4, %v364_v43  ;;  %v820_v43 = vrot.slane %v1766_v2, %v819_v32 }
  0xaa   : > { %636 = vmatprep.mubr.f32.mxu0 %v1616_v6 }
 0x169   : > { %v515_v45 = vpop.f32.mrf.mxu0 }
 0x16a   : > { %v516_v46 = vadd.f32 %v515_v45, %v443_v44  ;;  %v368_v45 = vld [vmem:[%s1890_s5 + $0x10] sm:$0xff] }
 0x16b   : > { %v517_v47 = vpop.f32.mrf.mxu0 }
 0x16c   : > { %v522_v48 = vmin.f32 %v516_v46, 0.0  ;;  %v518_v49 = vadd.f32 %v517_v47, %v443_v44  ;;  %vm520_vm5 = vcmp.gt.f32.partialorder %v516_v46, 0.0  ;;  %v824_v44 = vrot.slane %v1771_v3, %v819_v32 }
 0x16e   : > { %v524_v50 = vmul.f32 1.442695, %v522_v48  ;;  %v523_v51 = vmin.f32 %v518_v49, 0.0  ;;  %vm521_vm6 = vcmp.gt.f32.partialorder %v518_v49, 0.0 }
 0x170   : > { %1599 = vpow2.f32 %v524_v50  ;;  %v526_v52 = vmul.f32 1.442695, %v523_v51  ;;  %v999_v51 = vrot.slane %v1766_v2, %v998_v39 }
 0x172   : > { %1601 = vpow2.f32 %v526_v52  ;;  %v1091_v52 = vsub.s32 6, %v1758_v63  ;;  %v1185_v63 = vrot.slane %v1766_v2, %v1184_v10 }
 0x174   : > { %v1092_v62 = vrot.slane %v1766_v2, %v1091_v52  ;;  %v1560_v2 = vld [vmem:[%s1894_s9 + $0x10] ss:$0 sm:$0xff] }
 0x17d   : > { %v1600_v53 = vpop.eup %1599 }
 0x17e   : > { %v1550_v54 = vadd.f32 -1.0, %v1600_v53 }
 0x17f   : > { %v1602_v55 = vpop.eup %1601 }
 0x180   : > { %v1729_v56 = vsel %vm520_vm5, %v516_v46, %v1550_v54  ;;  %v1551_v57 = vadd.f32 -1.0, %v1602_v55 }
 0x181   : > { %551 = vrot.lane.b32.xlu1 %v1729_v56, %s1617_s11  ;;  %v911_v48 = vmul.f32 %v906_v36, %v1729_v56 }
 0x182   : > { %v1732_v58 = vsel %vm521_vm6, %v518_v49, %v1551_v57  ;;  %v1003_v57 = vrot.slane %v1771_v3, %v998_v39 }
 0x183   : > { %553 = vrot.lane.b32.xlu0 %v1732_v58, %s1617_s11  ;;  %v912_v47 = vmul.f32 %v910_v35, %v1732_v58 }
 0x185   : > { %532 = vrot.lane.b32.xlu1 %v1729_v56, %s1618_s12 }
 0x187   : > { %534 = vrot.lane.b32.xlu0 %v1732_v58, %s1618_s12 }
 0x189   : > { %717 = vrot.lane.b32.xlu1 %v1729_v56, %s1619_s15 }
 0x18b   : > { %719 = vrot.lane.b32.xlu0 %v1732_v58, %s1619_s15 }
 0x18d   : > { %810 = vrot.lane.b32.xlu1 %v1729_v56, %s1620_s16 }
 0x18f   : > { %812 = vrot.lane.b32.xlu0 %v1732_v58, %s1620_s16 }
 0x191   : > { %989 = vrot.lane.b32.xlu1 %v1729_v56, %s1621_s17 }
 0x193   : > { %991 = vrot.lane.b32.xlu0 %v1732_v58, %s1621_s17 }
 0x195   : > { %1082 = vrot.lane.b32.xlu1 %v1729_v56, %s1622_s18 }
 0x197   : > { %1084 = vrot.lane.b32.xlu0 %v1732_v58, %s1622_s18 }
 0x199   : > { %1175 = vrot.lane.b32.xlu1 %v1729_v56, %s1623_s19 }
 0x19b   : > { %1177 = vrot.lane.b32.xlu0 %v1732_v58, %s1623_s19 }
 0x19d   : > { %1268 = vrot.lane.b32.xlu1 %v1729_v56, %s1624_s20  ;;  %v369_v56 = vld [vmem:[%s1890_s5 + $0x18] sm:$0xff] }
 0x19f   : > { %1270 = vrot.lane.b32.xlu0 %v1732_v58, %s1624_s20  ;;  %v370_v58 = vld [vmem:[%s1890_s5 + $0x20] sm:$0xff] }
 0x1a1   : > { %1363 = vperm.xlu1 %1590, %v375_v59  }
 0x1a3   : > { %1382 = vperm.xlu0 %1589, %v378_v60  }
 0x1a5   : > { %1387 = vperm.xlu1 %1590, %v379_v61  }
 0x1f3   : > { %v552_v4 = vpop.permute.xlu1 %551 }
 0x1f5   : > { %v554_v11 = vpop.permute.xlu0 %553 }
 0x1f6   : > { %v556_v12 = vsel %vm555_vm7, %v552_v4, %v554_v11  ;;  %v557_v15 = vsel %vm555_vm7, %v554_v11, %v552_v4  ;;  %v371_v11 = vld [vmem:[%s1890_s5 + $0x28] sm:$0xff] }
 0x1f7   : > { %v566_v17 = vmul.f32 %v561_v5, %v557_v15  ;;  %v567_v18 = vmul.f32 %v565_v9, %v556_v12  ;;  %v533_v19 = vpop.permute.xlu1 %532  ;;  %v1096_v9 = vrot.slane %v1771_v3, %v1091_v52 }
 0x1f9   : > { %v535_v23 = vpop.permute.xlu0 %534  ;;  %602 = vmatprep.subr.mxu0 %v567_v18 }
 0x1fa   : > { %v540_v25 = vsel %vm538_vm8, %v535_v23, %v533_v19  ;;  %603 = vmatpush1.msra.mxu0 %v566_v17  ;;  %v539_v27 = vsel %vm538_vm8, %v533_v19, %v535_v23 }
 0x1fb   : > { %v718_v28 = vpop.permute.xlu1 %717  ;;  %v550_v30 = vmul.f32 %v548_v20, %v539_v27  ;;  %v549_v31 = vmul.f32 %v544_v21, %v540_v25  ;;  %1552 = vmatmul.mubr.msk.f32.vlgmr.msra.gmra.mxu0 %vm568_vm9, %v367_v22  ;;  %v1189_v20 = vrot.slane %v1771_v3, %v1184_v10  ;;  %v372_v21 = vld [vmem:[%s1890_s5 + $0x30] sm:$0xff]  ;;  %v1561_v3 = vld [vmem:[%s1894_s9 + $0x18] ss:$0 sm:$0xff] }
 0x1fc   : > { %801 = vmatprep.mubr.f32.mxu0 %v1616_v6  ;;  %v373_v27 = vld [vmem:[%s1890_s5 + $0x38] sm:$0xff] }
 0x1fd   : > { %v720_v34 = vpop.permute.xlu0 %719  ;;  %676 = vmatprep.subr.mxu1 %v550_v30 }
 0x1fe   : > { %v722_v37 = vsel %vm721_vm10, %v718_v28, %v720_v34  ;;  %v723_v38 = vsel %vm721_vm10, %v720_v34, %v718_v28  ;;  %677 = vmatpush1.msra.mxu1 %v549_v31 }
 0x1ff   : > { %v732_v40 = vmul.f32 %v727_v26, %v723_v38  ;;  %v733_v41 = vmul.f32 %v731_v29, %v722_v37  ;;  %v811_v42 = vpop.permute.xlu1 %810  ;;  %1553 = vmatmul.mubr.msk.f32.vlgmr.msra.gmra.mxu1 %vm568_vm9, %v366_v33  ;;  %v374_v33 = vld [vmem:[%s1890_s5 + $0x40] sm:$0xff] }
 0x200   : > { %894 = vmatprep.mubr.f32.mxu1 %v1616_v6 }
 0x201   : > { %v813_v46 = vpop.permute.xlu0 %812  ;;  %767 = vmatprep.subr.mxu0 %v733_v41 }
 0x202   : > { %v815_v49 = vsel %vm814_vm11, %v811_v42, %v813_v46  ;;  %v816_v50 = vsel %vm814_vm11, %v813_v46, %v811_v42  ;;  %768 = vmatpush1.msra.mxu0 %v732_v40 }
 0x203   : > { %v825_v53 = vmul.f32 %v820_v43, %v816_v50  ;;  %v826_v54 = vmul.f32 %v824_v44, %v815_v49  ;;  %946 = vmatprep.subr.mxu0 %v912_v47  ;;  %v990_v55 = vpop.permute.xlu1 %989  ;;  %1554 = vmatmul.mubr.msk.f32.vlgmr.msra.gmra.mxu0 %vm568_vm9, %v368_v45 }
 0x204   : > { %947 = vmatpush1.msra.mxu0 %v911_v48  ;;  %980 = vmatprep.mubr.f32.mxu0 %v1616_v6 }
 0x205   : > { %v992_v59 = vpop.permute.xlu0 %991  ;;  %860 = vmatprep.subr.mxu1 %v826_v54 }
 0x206   : > { %v994_v60 = vsel %vm993_vm12, %v990_v55, %v992_v59  ;;  %v995_v61 = vsel %vm993_vm12, %v992_v59, %v990_v55  ;;  %861 = vmatpush1.msra.mxu1 %v825_v53 }
 0x207   : > { %v1004_v1 = vmul.f32 %v999_v51, %v994_v60  ;;  %v1005_v4 = vmul.f32 %v1003_v57, %v995_v61  ;;  %v1083_v5 = vpop.permute.xlu1 %1082  ;;  %1555 = vmatmul.mubr.msk.f32.vlgmr.msra.gmra.mxu1 %vm568_vm9, %v369_v56  ;;  %1556 = vmatmul.mubr.msk.f32.vlgmr.msra.gmra.mxu0 %vm568_vm9, %v370_v58 }
 0x208   : > { %1073 = vmatprep.mubr.f32.mxu1 %v1616_v6  ;;  %1166 = vmatprep.mubr.f32.mxu0 %v1616_v6 }
 0x209   : > { %v1085_v12 = vpop.permute.xlu0 %1084  ;;  %1039 = vmatprep.subr.mxu1 %v1005_v4 }
 0x20a   : > { %v1087_v15 = vsel %vm1086_vm13, %v1083_v5, %v1085_v12  ;;  %v1088_v16 = vsel %vm1086_vm13, %v1085_v12, %v1083_v5  ;;  %1040 = vmatpush1.msra.mxu1 %v1004_v1 }
 0x20b   : > { %v1097_v17 = vmul.f32 %v1092_v62, %v1087_v15  ;;  %v1098_v18 = vmul.f32 %v1096_v9, %v1088_v16  ;;  %v1176_v19 = vpop.permute.xlu1 %1175  ;;  %1557 = vmatmul.mubr.msk.f32.vlgmr.msra.gmra.mxu1 %vm568_vm9, %v371_v11 }
 0x20c   : > { %1259 = vmatprep.mubr.f32.mxu1 %v1616_v6 }
 0x20d   : > { %v1178_v22 = vpop.permute.xlu0 %1177  ;;  %1132 = vmatprep.subr.mxu0 %v1098_v18 }
 0x20e   : > { %v1180_v23 = vsel %vm1179_vm14, %v1176_v19, %v1178_v22  ;;  %v1181_v24 = vsel %vm1179_vm14, %v1178_v22, %v1176_v19  ;;  %1133 = vmatpush1.msra.mxu0 %v1097_v17 }
 0x20f   : > { %v1190_v25 = vmul.f32 %v1185_v63, %v1180_v23  ;;  %v1191_v26 = vmul.f32 %v1189_v20, %v1181_v24  ;;  %1558 = vmatmul.mubr.msk.f32.vlgmr.msra.gmra.mxu0 %vm568_vm9, %v372_v21  ;;  %v1269_v28 = vpop.permute.xlu1 %1268  ;;  %v376_v24 = vld [vmem:[%s1892_s7] sm:$0xff] }
 0x210   : > { %1352 = vmatprep.mubr.f32.mxu0 %v1616_v6 }
 0x211   : > { %v1271_v29 = vpop.permute.xlu0 %1270  ;;  %1225 = vmatprep.subr.mxu1 %v1191_v26  ;;  %v377_v26 = vld [vmem:[%s1892_s7 + $0x8] sm:$0xff] }
 0x212   : > { %v1273_v30 = vsel %vm1272_vm15, %v1269_v28, %v1271_v29  ;;  %v1274_v31 = vsel %vm1272_vm15, %v1271_v29, %v1269_v28  ;;  %1226 = vmatpush1.msra.mxu1 %v1190_v25 }
 0x213   : > { %v1283_v0 = vmul.f32 %v1560_v2, %v1273_v30  ;;  %v1284_v32 = vmul.f32 %v1561_v3, %v1274_v31  ;;  %1559 = vmatmul.mubr.msk.f32.vlgmr.msra.gmra.mxu1 %vm568_vm9, %v373_v27 }
 0x214   : > { %1460 = vmatprep.mubr.f32.mxu1 %v1616_v6 }
 0x215   : > { %1318 = vmatprep.subr.mxu0 %v1284_v32 }
 0x216   : > { %1319 = vmatpush1.msra.mxu0 %v1283_v0 }
 0x217   : > { %1562 = vmatmul.mubr.msk.f32.vlgmr.msra.gmra.mxu0 %vm568_vm9, %v374_v33 }
 0x21c   : > { %v1364_v9 = vpop.permute.xlu1 %1363 }
 0x21e   : > { %v1383_v2 = vpop.permute.xlu0 %1382 }
 0x220   : > { %v1388_v31 = vpop.permute.xlu1 %1387 }
 0x2bb   : > { %v638_v34 = vpop.f32.mrf.mxu0 }
 0x2bd   : > { %v640_v35 = vpop.f32.mrf.mxu0 }
 0x2bf   : > { %v712_v36 = vpop.f32.mrf.mxu1 }
 0x2c0   : > { %v713_v37 = vadd.f32 %v712_v36, %v638_v34 }
 0x2c1   : > { %v714_v38 = vpop.f32.mrf.mxu1 }
 0x2c2   : > { %v715_v39 = vadd.f32 %v714_v38, %v640_v35 }
 0x2c3   : > { %v803_v40 = vpop.f32.mrf.mxu0 }
 0x2c4   : > { %v808_v41 = vadd.f32 %v803_v40, %v713_v37 }
 0x2c5   : > { %v805_v42 = vpop.f32.mrf.mxu0 }
 0x2c6   : > { %v809_v43 = vadd.f32 %v805_v42, %v715_v39 }
 0x2c7   : > { %v896_v44 = vpop.f32.mrf.mxu1  ;;  %v982_v45 = vpop.f32.mrf.mxu0 }
 0x2c8   : > { %v901_v46 = vadd.f32 %v896_v44, %v808_v41 }
 0x2c9   : > { %v898_v47 = vpop.f32.mrf.mxu1  ;;  %v984_v50 = vpop.f32.mrf.mxu0 }
 0x2ca   : > { %v902_v48 = vadd.f32 %v898_v47, %v809_v43  ;;  %v987_v49 = vadd.f32 %v982_v45, %v901_v46 }
 0x2cb   : > { %v1075_v51 = vpop.f32.mrf.mxu1 }
 0x2cc   : > { %v988_v52 = vadd.f32 %v984_v50, %v902_v48  ;;  %v1080_v53 = vadd.f32 %v1075_v51, %v987_v49 }
 0x2cd   : > { %v1077_v54 = vpop.f32.mrf.mxu1 }
 0x2ce   : > { %v1081_v57 = vadd.f32 %v1077_v54, %v988_v52 }
 0x2cf   : > { %v1168_v55 = vpop.f32.mrf.mxu0 }
 0x2d0   : > { %v1173_v56 = vadd.f32 %v1168_v55, %v1080_v53 }
 0x2d1   : > { %v1170_v58 = vpop.f32.mrf.mxu0 }
 0x2d2   : > { %v1174_v61 = vadd.f32 %v1170_v58, %v1081_v57 }
 0x2d3   : > { %v1261_v59 = vpop.f32.mrf.mxu1 }
 0x2d4   : > { %v1266_v62 = vadd.f32 %v1261_v59, %v1173_v56 }
 0x2d5   : > { %v1263_v60 = vpop.f32.mrf.mxu1 }
 0x2d6   : > { %v1267_v4 = vadd.f32 %v1263_v60, %v1174_v61 }
 0x2d7   : > { %v1354_v1 = vpop.f32.mrf.mxu0 }
 0x2d8   : > { %v1359_v5 = vadd.f32 %v1354_v1, %v1266_v62 }
 0x2d9   : > { %v1356_v10 = vpop.f32.mrf.mxu0 }
 0x2da   : > { %v1366_v11 = vadd.f32 %v1364_v9, %v1359_v5  ;;  %v1360_v12 = vadd.f32 %v1356_v10, %v1267_v4 }
 0x2dc   : > { %v1370_v15 = vmin.f32 %v1366_v11, 0.0  ;;  %v1367_v16 = vadd.f32 %v1364_v9, %v1360_v12  ;;  %vm1368_vm1 = vcmp.gt.f32.partialorder %v1366_v11, 0.0 }
 0x2de   : > { %v1372_v17 = vmul.f32 1.442695, %v1370_v15  ;;  %v1371_v18 = vmin.f32 %v1367_v16, 0.0  ;;  %vm1369_vm0 = vcmp.gt.f32.partialorder %v1367_v16, 0.0 }
 0x2e0   : > { %1603 = vpow2.f32 %v1372_v17  ;;  %v1374_v19 = vmul.f32 1.442695, %v1371_v18 }
 0x2e2   : > { %1605 = vpow2.f32 %v1374_v19 }
 0x2ed   : > { %v1604_v63 = vpop.eup %1603 }
 0x2ee   : > { %v1563_v21 = vadd.f32 -1.0, %v1604_v63 }
 0x2ef   : > { %v1606_v20 = vpop.eup %1605 }
 0x2f0   : > { %v1564_v22 = vadd.f32 -1.0, %v1606_v20  ;;  %v1378_v25 = vsel %vm1368_vm1, %v1366_v11, %v1563_v21 }
 0x2f2   : > { %v1379_v23 = vsel %vm1369_vm0, %v1367_v16, %v1564_v22 }
 0x2f3   : > { %1426 = vmatprep.subr.mxu1 %v1379_v23 }
 0x2f4   : > { %1427 = vmatpush1.msra.mxu1 %v1378_v25 }
 0x2f5   : > { %1565 = vmatmul.mubr.msk.f32.vlgmr.msra.gmra.mxu1 %vm568_vm9, %v376_v24 }
 0x2f6   : > { %1466 = vmatprep.mubr.f32.mxu1 %v1616_v6 }
 0x2f9   : > { %1566 = vmatmul.mubr.msk.f32.gmra.mxu1 %vm568_vm9, %v377_v26 }
 0x3b5   : > { %v1462_v3 = vpop.f32.mrf.mxu1 }
 0x3b6   : > { %v1463_v27 = vadd.f32 %v1462_v3, %v1383_v2 }
 0x3b7   : > { %v1464_v28 = vpop.f32.mrf.mxu1 }
 0x3b8   : > { %v1473_v29 = vadd.f32 %v1463_v27, %v1719_v13  ;;  %v1465_v30 = vadd.f32 %v1464_v28, %v1383_v2 }
 0x3b9   : > { %v1468_v6 = vpop.f32.mrf.mxu1 }
 0x3ba   : > { %1477 = vst [vmem:[%s359_s26] sm:$0xff] %v1473_v29  ;;  %v1474_v0 = vadd.f32 %v1465_v30, %v1721_v14  ;;  %v1469_v32 = vadd.f32 %v1468_v6, %v1388_v31 }
 0x3bb   : > { %v1470_v33 = vpop.f32.mrf.mxu1 }
 0x3bc   : > { %1478 = vst [vmem:[%s359_s26 + $0x8] sm:$0xff] %v1474_v0  ;;  %v1475_v34 = vadd.f32 %v1469_v32, %v1713_v7  ;;  %v1471_v35 = vadd.f32 %v1470_v33, %v1388_v31 }
 0x3be   : > { %1479 = vst [vmem:[%s359_s26 + $0x10] sm:$0xff] %v1475_v34  ;;  %v1476_v36 = vadd.f32 %v1471_v35, %v1715_v8 }
 0x3c0   : > { %1480 = vst [vmem:[%s359_s26 + $0x18] sm:$0xff] %v1476_v36 }
 0x3c1 PF: > { %s20_s13 = sadd.s32 1, %s1613_s13  }
 0x3c2   : > { %p17_p4 = scmp.ge.s32.totalorder %s20_s13, 4  }
 0x3c4   :  { %19 = sbr.rel (!%p17_p4) target bundleno = 1 (0x1), region = 90 }

</bundles_post_ra>
